<compile_context>
chip_gen: v6e
topology: v6e:2x2x1
jax: 0.10.0
libtpu: 0.0.40
codegen_flags: <defaults>
</compile_context>

<pallas_src>
import jax
import jax.numpy as jnp
from jax.experimental import pallas as pl
from jax.experimental.pallas import tpu as pltpu


def _round_up(n, m):
    return ((n + m - 1) // m) * m


def _num_batch_tiles():
    # v7x has 2 TensorCores per chip: give the "parallel" grid axis >= 2
    # programs there.  v5e/v6e are single-TC: the grid is a serial loop, so one
    # big tile minimizes fixed per-step overhead.
    try:
        kind = jax.devices()[0].device_kind.lower()
    except Exception:
        kind = ""
    return 2 if ("v7" in kind or "7x" in kind) else 1


def mlp_kernel(x_ref, w1_ref, b1_ref, w2t_ref, b2_ref, o_ref):
    # x_ref:   (tm, K)  activation tile (K tiny, e.g. 2)
    # w1_ref:  (K, H)   hidden weight, input-major  (h = x @ W1 + b1)
    # b1_ref:  (1, H)
    # w2t_ref: (N, H)   output weight pre-transposed so each output row is
    #                   lane-aligned with the hidden activations
    # b2_ref:  (1, N)
    # o_ref:   (tm, N)
    x = x_ref[...]
    w1 = w1_ref[...]
    K = x.shape[1]
    N = o_ref.shape[1]

    # ---- Layer 1 on the VPU: K=2 would occupy 2/128 MXU rows, so unrolled
    # broadcast multiply-adds are the shape-honest mapping. ----
    acc = x[:, 0:1] * w1[0:1, :]
    for k in range(1, K):
        acc = acc + x[:, k:k + 1] * w1[k:k + 1, :]
    h = jnp.maximum(acc + b1_ref[...], 0.0)            # (tm, H), f32

    # ---- Layer 2: N lane reductions (XLU) against the transposed weight rows. ----
    w2t = w2t_ref[...]
    b2 = b2_ref[...]
    for n in range(N):
        col = jnp.sum(h * w2t[n:n + 1, :], axis=1, keepdims=True) + b2[0:1, n:n + 1]
        o_ref[:, n:n + 1] = col.astype(o_ref.dtype)


def mynet_forward(x, w1, b1, w2, b2, *, tm_max=1024):
    """Fused Linear -> ReLU -> Linear forward.

    x: (B, K) f32; w1: (K, H); b1: (1, H); w2: (H, N); b2: (1, N).
    Returns (B, N) f32 == relu(x @ w1 + b1) @ w2 + b2.
    """
    B, K = x.shape
    H = w1.shape[1]
    N = w2.shape[1]

    n_tiles = _num_batch_tiles()
    # Batch tile: multiple of 8 sublanes, sized so B is covered in n_tiles steps.
    tm = min(tm_max, _round_up(pl.cdiv(B, n_tiles), 8))
    Bp = _round_up(B, tm)

    x = x.astype(jnp.float32)
    xp = x if Bp == B else jnp.pad(x, ((0, Bp - B), (0, 0)))
    w1 = w1.astype(jnp.float32)
    b1 = b1.astype(jnp.float32)
    w2t = jnp.transpose(w2.astype(jnp.float32))        # (N, H); tiny, const-folds under jit
    b2 = b2.astype(jnp.float32)

    cost = pl.CostEstimate(
        flops=2 * B * (K * H + H * N),
        transcendentals=0,
        bytes_accessed=4 * (Bp * K + K * H + H + N * H + N + Bp * N),
    )

    out = pl.pallas_call(
        mlp_kernel,
        out_shape=jax.ShapeDtypeStruct((Bp, N), jnp.float32),
        grid=(Bp // tm,),
        in_specs=[
            pl.BlockSpec((tm, K), lambda i: (i, 0)),   # activations stream over batch
            pl.BlockSpec((K, H), lambda i: (0, 0)),    # params stay resident in VMEM
            pl.BlockSpec((1, H), lambda i: (0, 0)),
            pl.BlockSpec((N, H), lambda i: (0, 0)),
            pl.BlockSpec((1, N), lambda i: (0, 0)),
        ],
        out_specs=pl.BlockSpec((tm, N), lambda i: (i, 0)),
        compiler_params=pltpu.CompilerParams(
            dimension_semantics=("parallel",),         # shards grid across TCs on v7x
        ),
        cost_estimate=cost,
    )(xp, w1, b1, w2t, b2)

    return out[:B]


def init_linear(key, fan_in, fan_out):
    # Deterministic init mimicking PyTorch nn.Linear's U(-1/sqrt(fan_in), 1/sqrt(fan_in)).
    kw, kb = jax.random.split(key)
    bound = 1.0 / jnp.sqrt(jnp.float32(fan_in))
    w = jax.random.uniform(kw, (fan_in, fan_out), jnp.float32, -bound, bound)
    b = jax.random.uniform(kb, (1, fan_out), jnp.float32, -bound, bound)
    return w, b


if __name__ == "__main__":
    key = jax.random.PRNGKey(0)
    k_data0, k_data1, k_l1, k_l2 = jax.random.split(key, 4)

    # Mirror the module's driver script: two Gaussian blobs around +2 and -2,
    # concatenated along the batch axis. n_feature=2, n_hidden=10, n_output=2.
    n_feature, n_hidden, n_output = 2, 10, 2
    n_per_class = 100
    x0 = 2.0 + jax.random.normal(k_data0, (n_per_class, n_feature), jnp.float32)
    x1 = -2.0 + jax.random.normal(k_data1, (n_per_class, n_feature), jnp.float32)
    x = jnp.concatenate([x0, x1], axis=0)              # (200, 2) float32

    w1, b1 = init_linear(k_l1, n_feature, n_hidden)
    w2, b2 = init_linear(k_l2, n_hidden, n_output)

    fwd = jax.jit(mynet_forward)                       # keeps wrapper plumbing out of the hot path
    out = fwd(x, w1, b1, w2, b2)
    jax.block_until_ready(out)

    # Sanity check against a pure-JAX reference of the same forward pass.
    ref = jnp.maximum(x @ w1 + b1, 0.0) @ w2 + b2
    assert out.shape == (2 * n_per_class, n_output)
    assert jnp.allclose(out, ref, atol=1e-5, rtol=1e-5)

    print("KERNEL_OK")
</pallas_src>

<mosaic_0001>
module attributes {stable_mosaic.version = 11 : i64} {
  func.func @mlp_kernel(%arg0: i32, %arg1: memref<200x2xf32, #tpu.memory_space<vmem>>, %arg2: memref<2x10xf32, #tpu.memory_space<vmem>>, %arg3: memref<1x10xf32, #tpu.memory_space<vmem>>, %arg4: memref<2x10xf32, #tpu.memory_space<vmem>>, %arg5: memref<1x2xf32, #tpu.memory_space<vmem>>, %arg6: memref<200x2xf32, #tpu.memory_space<vmem>>) attributes {dimension_semantics = [#tpu.dimension_semantics<parallel>], iteration_bounds = array<i64: 1>, scalar_prefetch = 0 : i64, scratch_operands = 0 : i64, tpu.core_type = #tpu.core_type<tc>, window_params = [{transform_indices = @transform_0, window_bounds = array<i64: 200, 2>}, {pipeline_mode = #tpu.pipeline_mode<synchronous>, transform_indices = @transform_1, window_bounds = array<i64: 2, 10>}, {pipeline_mode = #tpu.pipeline_mode<synchronous>, transform_indices = @transform_2, window_bounds = array<i64: 1, 10>}, {pipeline_mode = #tpu.pipeline_mode<synchronous>, transform_indices = @transform_3, window_bounds = array<i64: 2, 10>}, {pipeline_mode = #tpu.pipeline_mode<synchronous>, transform_indices = @transform_4, window_bounds = array<i64: 1, 2>}, {transform_indices = @transform_5, window_bounds = array<i64: 200, 2>}]} {
    %c0 = arith.constant 0 : index
    %c0_0 = arith.constant 0 : index
    %0 = vector.load %arg1[%c0, %c0_0] : memref<200x2xf32, #tpu.memory_space<vmem>>, vector<200x2xf32>
    %c0_1 = arith.constant 0 : index
    %c0_2 = arith.constant 0 : index
    %1 = vector.load %arg2[%c0_1, %c0_2] : memref<2x10xf32, #tpu.memory_space<vmem>>, vector<2x10xf32>
    %2 = vector.extract_strided_slice %0 {offsets = [0, 0], sizes = [200, 1], strides = [1, 1]} : vector<200x2xf32> to vector<200x1xf32>
    %3 = vector.extract_strided_slice %1 {offsets = [0, 0], sizes = [1, 10], strides = [1, 1]} : vector<2x10xf32> to vector<1x10xf32>
    %4 = vector.broadcast %2 : vector<200x1xf32> to vector<200x10xf32>
    %5 = vector.broadcast %3 : vector<1x10xf32> to vector<200x10xf32>
    %6 = arith.mulf %4, %5 : vector<200x10xf32>
    %7 = vector.extract_strided_slice %0 {offsets = [0, 1], sizes = [200, 1], strides = [1, 1]} : vector<200x2xf32> to vector<200x1xf32>
    %8 = vector.extract_strided_slice %1 {offsets = [1, 0], sizes = [1, 10], strides = [1, 1]} : vector<2x10xf32> to vector<1x10xf32>
    %9 = vector.broadcast %7 : vector<200x1xf32> to vector<200x10xf32>
    %10 = vector.broadcast %8 : vector<1x10xf32> to vector<200x10xf32>
    %11 = arith.mulf %9, %10 : vector<200x10xf32>
    %12 = arith.addf %6, %11 : vector<200x10xf32>
    %c0_3 = arith.constant 0 : index
    %c0_4 = arith.constant 0 : index
    %13 = vector.load %arg3[%c0_3, %c0_4] : memref<1x10xf32, #tpu.memory_space<vmem>>, vector<1x10xf32>
    %14 = vector.broadcast %13 : vector<1x10xf32> to vector<200x10xf32>
    %15 = arith.addf %12, %14 : vector<200x10xf32>
    %cst = arith.constant 0.000000e+00 : f32
    %16 = vector.broadcast %cst : f32 to vector<200x10xf32>
    %17 = arith.maximumf %15, %16 : vector<200x10xf32>
    %c0_5 = arith.constant 0 : index
    %c0_6 = arith.constant 0 : index
    %18 = vector.load %arg4[%c0_5, %c0_6] : memref<2x10xf32, #tpu.memory_space<vmem>>, vector<2x10xf32>
    %c0_7 = arith.constant 0 : index
    %c0_8 = arith.constant 0 : index
    %19 = vector.load %arg5[%c0_7, %c0_8] : memref<1x2xf32, #tpu.memory_space<vmem>>, vector<1x2xf32>
    %20 = vector.extract_strided_slice %18 {offsets = [0, 0], sizes = [1, 10], strides = [1, 1]} : vector<2x10xf32> to vector<1x10xf32>
    %21 = vector.broadcast %20 : vector<1x10xf32> to vector<200x10xf32>
    %22 = arith.mulf %17, %21 : vector<200x10xf32>
    %cst_9 = arith.constant dense<0.000000e+00> : vector<200xf32>
    %23 = vector.multi_reduction <add>, %22, %cst_9 [1] : vector<200x10xf32> to vector<200xf32>
    %24 = vector.shape_cast %23 : vector<200xf32> to vector<200x1xf32>
    %25 = vector.extract_strided_slice %19 {offsets = [0, 0], sizes = [1, 1], strides = [1, 1]} : vector<1x2xf32> to vector<1x1xf32>
    %26 = vector.broadcast %25 : vector<1x1xf32> to vector<200x1xf32>
    %27 = arith.addf %24, %26 : vector<200x1xf32>
    %c0_10 = arith.constant 0 : index
    %c0_11 = arith.constant 0 : index
    %28 = vector.load %arg6[%c0_10, %c0_11] : memref<200x2xf32, #tpu.memory_space<vmem>>, vector<200x1xf32>
    tpu.vector_store %arg6[%c0_10, %c0_11], %27 {strides = array<i32>} : memref<200x2xf32, #tpu.memory_space<vmem>>, vector<200x1xf32>,
    %29 = vector.extract_strided_slice %18 {offsets = [1, 0], sizes = [1, 10], strides = [1, 1]} : vector<2x10xf32> to vector<1x10xf32>
    %30 = vector.broadcast %29 : vector<1x10xf32> to vector<200x10xf32>
    %31 = arith.mulf %17, %30 : vector<200x10xf32>
    %cst_12 = arith.constant dense<0.000000e+00> : vector<200xf32>
    %32 = vector.multi_reduction <add>, %31, %cst_12 [1] : vector<200x10xf32> to vector<200xf32>
    %33 = vector.shape_cast %32 : vector<200xf32> to vector<200x1xf32>
    %34 = vector.extract_strided_slice %19 {offsets = [0, 1], sizes = [1, 1], strides = [1, 1]} : vector<1x2xf32> to vector<1x1xf32>
    %35 = vector.broadcast %34 : vector<1x1xf32> to vector<200x1xf32>
    %36 = arith.addf %33, %35 : vector<200x1xf32>
    %c0_13 = arith.constant 0 : index
    %c1 = arith.constant 1 : index
    %37 = vector.load %arg6[%c0_13, %c1] : memref<200x2xf32, #tpu.memory_space<vmem>>, vector<200x1xf32>
    tpu.vector_store %arg6[%c0_13, %c1], %36 {strides = array<i32>} : memref<200x2xf32, #tpu.memory_space<vmem>>, vector<200x1xf32>,
    return
  }
  func.func @transform_0(%arg0: i32) -> (i32, i32) {
    %c0_i32 = arith.constant 0 : i32
    %c0_i32_0 = arith.constant 0 : i32
    return %arg0, %c0_i32 : i32, i32
  }
  func.func @transform_1(%arg0: i32) -> (i32, i32) {
    %c0_i32 = arith.constant 0 : i32
    %c0_i32_0 = arith.constant 0 : i32
    %c0_i32_1 = arith.constant 0 : i32
    return %c0_i32, %c0_i32_0 : i32, i32
  }
  func.func @transform_2(%arg0: i32) -> (i32, i32) {
    %c0_i32 = arith.constant 0 : i32
    %c0_i32_0 = arith.constant 0 : i32
    %c0_i32_1 = arith.constant 0 : i32
    return %c0_i32, %c0_i32_0 : i32, i32
  }
  func.func @transform_3(%arg0: i32) -> (i32, i32) {
    %c0_i32 = arith.constant 0 : i32
    %c0_i32_0 = arith.constant 0 : i32
    %c0_i32_1 = arith.constant 0 : i32
    return %c0_i32, %c0_i32_0 : i32, i32
  }
  func.func @transform_4(%arg0: i32) -> (i32, i32) {
    %c0_i32 = arith.constant 0 : i32
    %c0_i32_0 = arith.constant 0 : i32
    %c0_i32_1 = arith.constant 0 : i32
    return %c0_i32, %c0_i32_0 : i32, i32
  }
  func.func @transform_5(%arg0: i32) -> (i32, i32) {
    %c0_i32 = arith.constant 0 : i32
    %c0_i32_0 = arith.constant 0 : i32
    return %arg0, %c0_i32 : i32, i32
  }
}

</mosaic_0001>

<bundles_post_ra>
// kernel: mynet_forward.1
= control target key start
LH: loop header
LB: loop body
LE: loop exit
PB: predicated region body
PF: predicated region fallthrough
CT: control target
= control target key end

     0   :  { %v742_v0 = vmov 0   ;;  %v743_v26 = vmov 1   ;;  %v171_v45 = vlaneseq  ;;  %vm442_vm0 = vcmask 80896   ;;  %s1539_s0 = inlined_call_operand.vmem [shape: f32[200,2], index: 0, kind: input, shape index: {}]   ;;  %s1540_s1 = inlined_call_operand.vmem [shape: f32[2,10], index: 1, kind: input, shape index: {}]   ;;  %s1541_s2 = inlined_call_operand.vmem [shape: f32[1,10], index: 2, kind: input, shape index: {}]   ;;  %s1542_s3 = inlined_call_operand.vmem [shape: f32[2,10], index: 3, kind: input, shape index: {}]   ;;  %s1543_s4 = inlined_call_operand.vmem [shape: f32[1,2], index: 4, kind: input, shape index: {}]   ;;  %s1544_s5 = inlined_call_operand.vmem [shape: f32[200,2], index: 5, kind: output, shape index: {}]  }
   0x1   :  { %739 = vset.pattern.permute.xlu1 %v742_v0  ;;  %738 = vset.pattern.permute.xlu0 %v742_v0  ;;  %v22_v1 = vld [vmem:[%s1539_s0 + $0x10] sm:$0xff]  ;;  %v20_v2 = vld [vmem:[%s1539_s0] sm:$0xff]  ;;  %v23_v3 = vld [vmem:[%s1539_s0 + $0x18] sm:$0xff]  ;;  %vm549_vm1 = vcmask 7168   ;;  %vm704_vm2 = vcmask 15368  }
   0x2   :  { %58 = vperm.xlu1 %739, %v22_v1   ;;  %48 = vperm.xlu0 %738, %v20_v2   ;;  %v21_v4 = vld [vmem:[%s1539_s0 + $0x8] sm:$0xff]  ;;  %v24_v6 = vld [vmem:[%s1539_s0 + $0x20] sm:$0xff]  ;;  %v27_v7 = vld [vmem:[%s1539_s0 + $0x38] sm:$0xff]  ;;  %v875_v48 = vshrl.u32 %v171_v45, 7 }
   0x3   :  { %v25_v5 = vld [vmem:[%s1539_s0 + $0x28] sm:$0xff]  ;;  %v26_v8 = vld [vmem:[%s1539_s0 + $0x30] sm:$0xff]  ;;  %v28_v10 = vld [vmem:[%s1539_s0 + $0x40] sm:$0xff] }
   0x4   :  { %v29_v9 = vld [vmem:[%s1539_s0 + $0x48] sm:$0xff]  ;;  %v31_v11 = vld [vmem:[%s1539_s0 + $0x58] sm:$0xff]  ;;  %v30_v12 = vld [vmem:[%s1539_s0 + $0x50] sm:$0xff]  ;;  %v173_v51 = vsub.s32 0, %v875_v48  ;;  %v302_v52 = vsub.s32 1, %v875_v48 }
   0x5   :  { %v33_v13 = vld [vmem:[%s1539_s0 + $0x68] sm:$0xff]  ;;  %v32_v14 = vld [vmem:[%s1539_s0 + $0x60] sm:$0xff]  ;;  %v35_v15 = vld [vmem:[%s1539_s0 + $0x78] sm:$0xff] }
   0x6   :  { %63 = vperm.xlu1 %739, %v23_v3   ;;  %53 = vperm.xlu0 %738, %v21_v4   ;;  %v34_v16 = vld [vmem:[%s1539_s0 + $0x70] sm:$0xff]  ;;  %v37_v17 = vld [vmem:[%s1539_s0 + $0x88] sm:$0xff]  ;;  %v36_v18 = vld [vmem:[%s1539_s0 + $0x80] sm:$0xff] }
   0x7   :  { %v39_v19 = vld [vmem:[%s1539_s0 + $0x98] sm:$0xff]  ;;  %v38_v20 = vld [vmem:[%s1539_s0 + $0x90] sm:$0xff]  ;;  %v41_v21 = vld [vmem:[%s1539_s0 + $0xa8] sm:$0xff] }
   0x8   :  { %v40_v22 = vld [vmem:[%s1539_s0 + $0xa0] sm:$0xff]  ;;  %v43_v23 = vld [vmem:[%s1539_s0 + $0xb8] sm:$0xff]  ;;  %v42_v24 = vld [vmem:[%s1539_s0 + $0xb0] sm:$0xff] }
   0x9   :  { %v44_v25 = vld [vmem:[%s1539_s0 + $0xc0] sm:$0xff] }
   0xa   :  { %73 = vperm.xlu1 %739, %v25_v5   ;;  %68 = vperm.xlu0 %738, %v24_v6   ;;  %v45_v53 = vld [vmem:[%s1540_s1] sm:$0x3] }
   0xb   :  { %v890_v56 = vrot.slane %v45_v53, %v173_v51  ;;  %v894_v57 = vrot.slane %v45_v53, %v302_v52  ;;  %v903_v62 = vld [vmem:[%s1541_s2] ss:$0 sm:$0xff] }
   0xc   :  { %v908_v0 = vld [vmem:[%s1542_s3] sm:$0x3] }
   0xe   :  { %83 = vperm.xlu1 %739, %v27_v7   ;;  %78 = vperm.xlu0 %738, %v26_v8  }
  0x12   :  { %93 = vperm.xlu1 %739, %v29_v9   ;;  %88 = vperm.xlu0 %738, %v28_v10  }
  0x16   :  { %103 = vperm.xlu1 %739, %v31_v11   ;;  %98 = vperm.xlu0 %738, %v30_v12  }
  0x1a   :  { %113 = vperm.xlu1 %739, %v33_v13   ;;  %108 = vperm.xlu0 %738, %v32_v14  }
  0x1e   :  { %123 = vperm.xlu1 %739, %v35_v15   ;;  %118 = vperm.xlu0 %738, %v34_v16  }
  0x22   :  { %133 = vperm.xlu1 %739, %v37_v17   ;;  %128 = vperm.xlu0 %738, %v36_v18  }
  0x26   :  { %143 = vperm.xlu1 %739, %v39_v19   ;;  %138 = vperm.xlu0 %738, %v38_v20  }
  0x2a   :  { %153 = vperm.xlu1 %739, %v41_v21   ;;  %148 = vperm.xlu0 %738, %v40_v22  }
  0x2e   :  { %163 = vperm.xlu1 %739, %v43_v23   ;;  %158 = vperm.xlu0 %738, %v42_v24  }
  0x32   :  { %740 = vset.pattern.permute.xlu1 %v743_v26  ;;  %168 = vperm.xlu0 %738, %v44_v25  }
  0x33   :  { %201 = vperm.xlu1 %740, %v20_v2  }
  0x36   :  { %741 = vset.pattern.permute.xlu0 %v743_v26 }
  0x37   :  { %209 = vperm.xlu1 %740, %v22_v1   ;;  %205 = vperm.xlu0 %741, %v21_v4  }
  0x3b   :  { %213 = vperm.xlu1 %740, %v23_v3   ;;  %217 = vperm.xlu0 %741, %v24_v6  }
  0x3f   :  { %221 = vperm.xlu1 %740, %v25_v5   ;;  %225 = vperm.xlu0 %741, %v26_v8   ;;  %v918_v8 = vrot.slane %v908_v0, %v173_v51 }
  0x43   :  { %229 = vperm.xlu1 %740, %v27_v7   ;;  %233 = vperm.xlu0 %741, %v28_v10  }
  0x47   :  { %237 = vperm.xlu1 %740, %v29_v9   ;;  %241 = vperm.xlu0 %741, %v30_v12  }
  0x4b   :  { %245 = vperm.xlu1 %740, %v31_v11   ;;  %249 = vperm.xlu0 %741, %v32_v14  }
  0x4f   :  { %253 = vperm.xlu1 %740, %v33_v13   ;;  %257 = vperm.xlu0 %741, %v34_v16  }
  0x53   :  { %261 = vperm.xlu1 %740, %v35_v15   ;;  %265 = vperm.xlu0 %741, %v36_v18  }
  0x57   :  { %269 = vperm.xlu1 %740, %v37_v17   ;;  %273 = vperm.xlu0 %741, %v38_v20  }
  0x5b   :  { %277 = vperm.xlu1 %740, %v39_v19   ;;  %281 = vperm.xlu0 %741, %v40_v22  }
  0x5f   :  { %285 = vperm.xlu1 %740, %v41_v21   ;;  %289 = vperm.xlu0 %741, %v42_v24  }
  0x63   :  { %293 = vperm.xlu1 %740, %v43_v23   ;;  %297 = vperm.xlu0 %741, %v44_v25  }
  0x7d   :  { %v59_v27 = vpop.permute.xlu1 %58  ;;  %v49_v28 = vpop.permute.xlu0 %48 }
  0x7e   :  { %v175_v60 = vmul.f32 %v890_v56, %v49_v28  ;;  %v177_v1 = vmul.f32 %v890_v56, %v59_v27 }
  0x81   :  { %v64_v29 = vpop.permute.xlu1 %63  ;;  %v54_v30 = vpop.permute.xlu0 %53 }
  0x82   :  { %v176_v4 = vmul.f32 %v890_v56, %v54_v30  ;;  %v178_v12 = vmul.f32 %v890_v56, %v64_v29 }
  0x85   :  { %v74_v31 = vpop.permute.xlu1 %73  ;;  %v69_v32 = vpop.permute.xlu0 %68 }
  0x86   :  { %v179_v13 = vmul.f32 %v890_v56, %v69_v32  ;;  %v180_v24 = vmul.f32 %v890_v56, %v74_v31 }
  0x89   :  { %v849_v33 = vpop.permute.xlu1 %83  ;;  %v79_v34 = vpop.permute.xlu0 %78 }
  0x8a   :  { %v181_v25 = vmul.f32 %v890_v56, %v79_v34  ;;  %v182_v34 = vmul.f32 %v890_v56, %v849_v33 }
  0x8d   :  { %v851_v35 = vpop.permute.xlu1 %93  ;;  %v853_v36 = vpop.permute.xlu0 %88 }
  0x91   :  { %v855_v37 = vpop.permute.xlu1 %103  ;;  %v857_v38 = vpop.permute.xlu0 %98 }
  0x95   :  { %v859_v39 = vpop.permute.xlu1 %113  ;;  %v861_v40 = vpop.permute.xlu0 %108 }
  0x99   :  { %v863_v41 = vpop.permute.xlu1 %123  ;;  %v865_v42 = vpop.permute.xlu0 %118 }
  0x9d   :  { %v867_v43 = vpop.permute.xlu1 %133  ;;  %v869_v44 = vpop.permute.xlu0 %128 }
  0xa1   :  { %v871_v46 = vpop.permute.xlu1 %143  ;;  %v873_v47 = vpop.permute.xlu0 %138 }
  0xa5   :  { %v877_v49 = vpop.permute.xlu1 %153  ;;  %v879_v50 = vpop.permute.xlu0 %148 }
  0xa9   :  { %v886_v54 = vpop.permute.xlu1 %163  ;;  %v888_v55 = vpop.permute.xlu0 %158 }
  0xad   :  { %v896_v58 = vpop.permute.xlu0 %168 }
  0xae   :  { %v202_v59 = vpop.permute.xlu1 %201 }
  0xaf   :  { %v304_v61 = vmul.f32 %v894_v57, %v202_v59 }
  0xb1   :  { %v329_v63 = vadd.f32 %v304_v61, %v175_v60  ;;  %v183_v61 = vmul.f32 %v890_v56, %v853_v36 }
  0xb2   :  { %v210_v2 = vpop.permute.xlu1 %209  ;;  %v206_v3 = vpop.permute.xlu0 %205 }
  0xb3   :  { %v913_v5 = vadd.f32 %v903_v62, %v329_v63  ;;  %v306_v6 = vmul.f32 %v894_v57, %v210_v2  ;;  %v305_v7 = vmul.f32 %v894_v57, %v206_v3 }
  0xb5   :  { %v331_v9 = vadd.f32 %v306_v6, %v177_v1  ;;  %v330_v10 = vadd.f32 %v305_v7, %v176_v4  ;;  %v386_v11 = vmax.f32 %v913_v5, 0.0 }
  0xb6   :  { %v214_v14 = vpop.permute.xlu1 %213  ;;  %v218_v15 = vpop.permute.xlu0 %217 }
  0xb7   :  { %v924_v16 = vadd.f32 %v903_v62, %v331_v9  ;;  %v927_v17 = vadd.f32 %v903_v62, %v330_v10  ;;  %v307_v18 = vmul.f32 %v894_v57, %v214_v14  ;;  %v308_v19 = vmul.f32 %v894_v57, %v218_v15 }
  0xb8   :  { %v417_v20 = vmul.f32 %v918_v8, %v386_v11  ;;  %v184_v10 = vmul.f32 %v890_v56, %v851_v35 }
  0xb9   :  { %v332_v21 = vadd.f32 %v307_v18, %v178_v12  ;;  %v333_v22 = vadd.f32 %v308_v19, %v179_v13  ;;  %v387_v23 = vmax.f32 %v927_v17, 0.0  ;;  %v388_v29 = vmax.f32 %v924_v16, 0.0 }
  0xba   :  { %v222_v26 = vpop.permute.xlu1 %221  ;;  %v443_v27 = vsel %vm442_vm0, %v417_v20, 0.0  ;;  %v226_v28 = vpop.permute.xlu0 %225 }
  0xbb   :  { %v940_v30 = vadd.f32 %v903_v62, %v332_v21  ;;  %v943_v32 = vadd.f32 %v903_v62, %v333_v22  ;;  %v309_v45 = vmul.f32 %v894_v57, %v222_v26  ;;  %444 = vadd.xlane.f32.xlu1 %v443_v27  ;;  %v310_v51 = vmul.f32 %v894_v57, %v226_v28 }
  0xbc   :  { %v418_v31 = vmul.f32 %v918_v8, %v387_v23  ;;  %v419_v3 = vmul.f32 %v918_v8, %v388_v29  ;;  %v186_v26 = vmul.f32 %v890_v56, %v855_v37  ;;  %v185_v27 = vmul.f32 %v890_v56, %v857_v38 }
  0xbd   :  { %v334_v53 = vadd.f32 %v309_v45, %v180_v24  ;;  %v335_v59 = vadd.f32 %v310_v51, %v181_v25  ;;  %v389_v60 = vmax.f32 %v940_v30, 0.0  ;;  %v390_v4 = vmax.f32 %v943_v32, 0.0 }
  0xbe   :  { %v230_v63 = vpop.permute.xlu1 %229  ;;  %v446_v1 = vsel %vm442_vm0, %v418_v31, 0.0  ;;  %v234_v2 = vpop.permute.xlu0 %233  ;;  %v449_v19 = vsel %vm442_vm0, %v419_v3, 0.0  ;;  %v187_v51 = vmul.f32 %v890_v56, %v861_v40 }
  0xbf   :  { %v961_v6 = vadd.f32 %v903_v62, %v334_v53  ;;  %v964_v33 = vadd.f32 %v903_v62, %v335_v59  ;;  %v311_v7 = vmul.f32 %v894_v57, %v230_v63  ;;  %447 = vadd.xlane.f32.xlu0 %v446_v1  ;;  %v312_v36 = vmul.f32 %v894_v57, %v234_v2 }
  0xc0   :  { %v420_v9 = vmul.f32 %v918_v8, %v389_v60  ;;  %v421_v21 = vmul.f32 %v918_v8, %v390_v4 }
  0xc1   :  { %v336_v12 = vadd.f32 %v311_v7, %v182_v34  ;;  %v337_v13 = vadd.f32 %v312_v36, %v183_v61  ;;  %v391_v14 = vmax.f32 %v961_v6, 0.0  ;;  %v392_v22 = vmax.f32 %v964_v33, 0.0 }
  0xc2   :  { %v238_v15 = vpop.permute.xlu1 %237  ;;  %v452_v18 = vsel %vm442_vm0, %v420_v9, 0.0  ;;  %v242_v20 = vpop.permute.xlu0 %241  ;;  %v455_v38 = vsel %vm442_vm0, %v421_v21, 0.0 }
  0xc3   :  { %v981_v24 = vadd.f32 %v903_v62, %v336_v12  ;;  %v984_v35 = vadd.f32 %v903_v62, %v337_v13  ;;  %v313_v25 = vmul.f32 %v894_v57, %v238_v15  ;;  %453 = vadd.xlane.f32.xlu1 %v452_v18  ;;  %450 = vadd.xlane.f32.xlu0 %v449_v19 }
  0xc4   :  { %v314_v28 = vmul.f32 %v894_v57, %v242_v20  ;;  %v422_v45 = vmul.f32 %v918_v8, %v391_v14  ;;  %v423_v1 = vmul.f32 %v918_v8, %v392_v22  ;;  %v188_v15 = vmul.f32 %v890_v56, %v859_v39 }
  0xc5   :  { %v338_v31 = vadd.f32 %v313_v25, %v184_v10  ;;  %v393_v34 = vmax.f32 %v981_v24, 0.0  ;;  %v394_v53 = vmax.f32 %v984_v35, 0.0  ;;  %v190_v39 = vmul.f32 %v890_v56, %v863_v41 }
  0xc6   :  { %v339_v59 = vadd.f32 %v314_v28, %v185_v27  ;;  %v246_v61 = vpop.permute.xlu1 %245  ;;  %v458_v37 = vsel %vm442_vm0, %v422_v45, 0.0  ;;  %v250_v63 = vpop.permute.xlu0 %249  ;;  %v461_v20 = vsel %vm442_vm0, %v423_v1, 0.0  ;;  %v189_v45 = vmul.f32 %v890_v56, %v865_v42 }
  0xc7   :  { %v1005_v2 = vadd.f32 %v903_v62, %v338_v31  ;;  %v315_v40 = vmul.f32 %v894_v57, %v246_v61  ;;  %459 = vadd.xlane.f32.xlu1 %v458_v37  ;;  %456 = vadd.xlane.f32.xlu0 %v455_v38  ;;  %v316_v3 = vmul.f32 %v894_v57, %v250_v63 }
  0xc8   :  { %v1010_v7 = vadd.f32 %v903_v62, %v339_v59  ;;  %v424_v36 = vmul.f32 %v918_v8, %v393_v34  ;;  %v425_v13 = vmul.f32 %v918_v8, %v394_v53  ;;  %v191_v59 = vmul.f32 %v890_v56, %v869_v44 }
  0xc9   :  { %v340_v9 = vadd.f32 %v315_v40, %v186_v26  ;;  %v341_v10 = vadd.f32 %v316_v3, %v187_v51  ;;  %v395_v12 = vmax.f32 %v1005_v2, 0.0 }
  0xca   :  { %v254_v18 = vpop.permute.xlu1 %253  ;;  %v464_v19 = vsel %vm442_vm0, %v424_v36, 0.0  ;;  %v258_v21 = vpop.permute.xlu0 %257  ;;  %v396_v25 = vmax.f32 %v1010_v7, 0.0  ;;  %v467_v37 = vsel %vm442_vm0, %v425_v13, 0.0 }
  0xcb   :  { %v1025_v26 = vadd.f32 %v903_v62, %v340_v9  ;;  %v1028_v27 = vadd.f32 %v903_v62, %v341_v10  ;;  %v317_v28 = vmul.f32 %v894_v57, %v254_v18  ;;  %465 = vadd.xlane.f32.xlu1 %v464_v19  ;;  %462 = vadd.xlane.f32.xlu0 %v461_v20 }
  0xcc   :  { %v318_v51 = vmul.f32 %v894_v57, %v258_v21  ;;  %v426_v31 = vmul.f32 %v918_v8, %v395_v12  ;;  %v427_v42 = vmul.f32 %v918_v8, %v396_v25 }
  0xcd   :  { %v342_v61 = vadd.f32 %v317_v28, %v188_v15  ;;  %v397_v38 = vmax.f32 %v1025_v26, 0.0  ;;  %v398_v3 = vmax.f32 %v1028_v27, 0.0  ;;  %v192_v15 = vmul.f32 %v890_v56, %v867_v43 }
  0xce   :  { %v343_v63 = vadd.f32 %v318_v51, %v189_v45  ;;  %v262_v1 = vpop.permute.xlu1 %261  ;;  %v470_v41 = vsel %vm442_vm0, %v426_v31, 0.0  ;;  %v266_v40 = vpop.permute.xlu0 %265  ;;  %v473_v45 = vsel %vm442_vm0, %v427_v42, 0.0 }
  0xcf   :  { %v1049_v36 = vadd.f32 %v903_v62, %v342_v61  ;;  %v319_v44 = vmul.f32 %v894_v57, %v262_v1  ;;  %471 = vadd.xlane.f32.xlu1 %v470_v41  ;;  %468 = vadd.xlane.f32.xlu0 %v467_v37  ;;  %v320_v9 = vmul.f32 %v894_v57, %v266_v40 }
  0xd0   :  { %v1054_v10 = vadd.f32 %v903_v62, %v343_v63  ;;  %v428_v13 = vmul.f32 %v918_v8, %v397_v38  ;;  %v429_v31 = vmul.f32 %v918_v8, %v398_v3  ;;  %v193_v63 = vmul.f32 %v890_v56, %v873_v47 }
  0xd1   :  { %v344_v18 = vadd.f32 %v319_v44, %v190_v39  ;;  %v345_v19 = vadd.f32 %v320_v9, %v191_v59  ;;  %v399_v20 = vmax.f32 %v1049_v36, 0.0  ;;  %v194_v59 = vmul.f32 %v890_v56, %v871_v46 }
  0xd2   :  { %v270_v21 = vpop.permute.xlu1 %269  ;;  %v476_v28 = vsel %vm442_vm0, %v428_v13, 0.0  ;;  %v274_v51 = vpop.permute.xlu0 %273  ;;  %v400_v61 = vmax.f32 %v1054_v10, 0.0  ;;  %v195_v40 = vmul.f32 %v890_v56, %v879_v50  ;;  %v479_v47 = vsel %vm442_vm0, %v429_v31, 0.0 }
  0xd3   :  { %v1069_v37 = vadd.f32 %v903_v62, %v344_v18  ;;  %v1072_v43 = vadd.f32 %v903_v62, %v345_v19  ;;  %v321_v39 = vmul.f32 %v894_v57, %v270_v21  ;;  %477 = vadd.xlane.f32.xlu1 %v476_v28  ;;  %474 = vadd.xlane.f32.xlu0 %v473_v45 }
  0xd4   :  { %v322_v1 = vmul.f32 %v894_v57, %v274_v51  ;;  %v430_v41 = vmul.f32 %v918_v8, %v399_v20  ;;  %v431_v21 = vmul.f32 %v918_v8, %v400_v61 }
  0xd5   :  { %v346_v42 = vadd.f32 %v321_v39, %v192_v15  ;;  %v1545_v44 = vmax.f32 %v1069_v37, 0.0  ;;  %v402_v9 = vmax.f32 %v1072_v43, 0.0 }
  0xd6   :  { %v347_v13 = vadd.f32 %v322_v1, %v193_v63  ;;  %v278_v18 = vpop.permute.xlu1 %277  ;;  %v482_v46 = vsel %vm442_vm0, %v430_v41, 0.0  ;;  %v282_v19 = vpop.permute.xlu0 %281  ;;  %v196_v41 = vmul.f32 %v890_v56, %v877_v49  ;;  %v198_v49 = vmul.f32 %v890_v56, %v886_v54 }
  0xd7   :  { %v1093_v28 = vadd.f32 %v903_v62, %v346_v42  ;;  %v323_v50 = vmul.f32 %v894_v57, %v278_v18  ;;  %483 = vadd.xlane.f32.xlu1 %v482_v46  ;;  %480 = vadd.xlane.f32.xlu0 %v479_v47  ;;  %v324_v15 = vmul.f32 %v894_v57, %v282_v19 }
  0xd8   :  { %v1098_v45 = vadd.f32 %v903_v62, %v347_v13  ;;  %v432_v51 = vmul.f32 %v918_v8, %v1545_v44  ;;  %v433_v1 = vmul.f32 %v918_v8, %v402_v9  ;;  %v485_v13 = vsel %vm442_vm0, %v431_v21, 0.0 }
  0xd9   :  { %v348_v31 = vadd.f32 %v323_v50, %v194_v59  ;;  %v349_v39 = vadd.f32 %v324_v15, %v195_v40  ;;  %v1546_v63 = vmax.f32 %v1093_v28, 0.0  ;;  %v197_v50 = vmul.f32 %v890_v56, %v888_v55 }
  0xda   :  { %v286_v42 = vpop.permute.xlu1 %285  ;;  %v488_v18 = vsel %vm442_vm0, %v432_v51, 0.0  ;;  %v290_v46 = vpop.permute.xlu0 %289  ;;  %v404_v47 = vmax.f32 %v1098_v45, 0.0  ;;  %v199_v51 = vmul.f32 %v890_v56, %v896_v58 }
  0xdb   :  { %v1113_v59 = vadd.f32 %v903_v62, %v348_v31  ;;  %v1116_v40 = vadd.f32 %v903_v62, %v349_v39  ;;  %v325_v19 = vmul.f32 %v894_v57, %v286_v42  ;;  %489 = vadd.xlane.f32.xlu1 %v488_v18  ;;  %486 = vadd.xlane.f32.xlu0 %v485_v13  ;;  %v491_v39 = vsel %vm442_vm0, %v433_v1, 0.0 }
  0xdc   :  { %v326_v21 = vmul.f32 %v894_v57, %v290_v46  ;;  %v434_v15 = vmul.f32 %v918_v8, %v1546_v63  ;;  %v435_v55 = vmul.f32 %v918_v8, %v404_v47 }
  0xdd   :  { %v350_v31 = vadd.f32 %v325_v19, %v196_v41  ;;  %v405_v42 = vmax.f32 %v1113_v59, 0.0  ;;  %v406_v46 = vmax.f32 %v1116_v40, 0.0 }
  0xde   :  { %v351_v18 = vadd.f32 %v326_v21, %v197_v50  ;;  %v294_v13 = vpop.permute.xlu1 %293  ;;  %v494_v54 = vsel %vm442_vm0, %v434_v15, 0.0  ;;  %v298_v44 = vpop.permute.xlu0 %297 }
  0xdf   :  { %v1137_v63 = vadd.f32 %v903_v62, %v350_v31  ;;  %v327_v56 = vmul.f32 %v894_v57, %v294_v13  ;;  %495 = vadd.xlane.f32.xlu1 %v494_v54  ;;  %492 = vadd.xlane.f32.xlu0 %v491_v39  ;;  %v328_v58 = vmul.f32 %v894_v57, %v298_v44  ;;  %v497_v31 = vsel %vm442_vm0, %v435_v55, 0.0 }
  0xe0   :  { %v1142_v1 = vadd.f32 %v903_v62, %v351_v18  ;;  %v436_v41 = vmul.f32 %v918_v8, %v405_v42  ;;  %v437_v39 = vmul.f32 %v918_v8, %v406_v46 }
  0xe1   :  { %v352_v19 = vadd.f32 %v327_v56, %v198_v49  ;;  %v353_v50 = vadd.f32 %v328_v58, %v199_v51  ;;  %v407_v21 = vmax.f32 %v1137_v63, 0.0 }
  0xe2   :  { %v500_v15 = vsel %vm442_vm0, %v436_v41, 0.0  ;;  %v408_v57 = vmax.f32 %v1142_v1, 0.0  ;;  %v503_v54 = vsel %vm442_vm0, %v437_v39, 0.0  ;;  %v1547_v39 = vmax.f32 %v1069_v37, 0.0 }
  0xe3   :  { %v1155_v44 = vadd.f32 %v903_v62, %v352_v19  ;;  %v1158_v18 = vadd.f32 %v903_v62, %v353_v50  ;;  %501 = vadd.xlane.f32.xlu1 %v500_v15  ;;  %498 = vadd.xlane.f32.xlu0 %v497_v31  ;;  %v438_v49 = vmul.f32 %v918_v8, %v407_v21 }
  0xe4   :  { %v439_v55 = vmul.f32 %v918_v8, %v408_v57  ;;  %v1172_v62 = vrot.slane %v908_v0, %v302_v52 }
  0xe5   :  { %v506_v51 = vsel %vm442_vm0, %v438_v49, 0.0  ;;  %v409_v13 = vmax.f32 %v1155_v44, 0.0  ;;  %v410_v56 = vmax.f32 %v1158_v18, 0.0  ;;  %v1548_v49 = vmax.f32 %v1093_v28, 0.0 }
  0xe6   :  { %v509_v19 = vsel %vm442_vm0, %v439_v55, 0.0  ;;  %v579_v50 = vmul.f32 %v1172_v62, %v386_v11  ;;  %v581_v15 = vmul.f32 %v1172_v62, %v388_v29  ;;  %v580_v5 = vmul.f32 %v1172_v62, %v387_v23 }
  0xe7   :  { %507 = vadd.xlane.f32.xlu1 %v506_v51  ;;  %504 = vadd.xlane.f32.xlu0 %v503_v54  ;;  %v440_v58 = vmul.f32 %v918_v8, %v409_v13  ;;  %v441_v48 = vmul.f32 %v918_v8, %v410_v56  ;;  %v583_v31 = vmul.f32 %v1172_v62, %v390_v4 }
  0xe8   :  { %v604_v52 = vsel %vm442_vm0, %v579_v50, 0.0  ;;  %v610_v11 = vsel %vm442_vm0, %v581_v15, 0.0  ;;  %v607_v8 = vsel %vm442_vm0, %v580_v5, 0.0  ;;  %v582_v16 = vmul.f32 %v1172_v62, %v389_v60 }
  0xe9   :  { %v512_v41 = vsel %vm442_vm0, %v440_v58, 0.0  ;;  %v515_v0 = vsel %vm442_vm0, %v441_v48, 0.0  ;;  %v616_v17 = vsel %vm442_vm0, %v583_v31, 0.0  ;;  %v585_v29 = vmul.f32 %v1172_v62, %v392_v22 }
  0xea   :  { %v613_v23 = vsel %vm442_vm0, %v582_v16, 0.0  ;;  %v584_v32 = vmul.f32 %v1172_v62, %v391_v14  ;;  %v587_v4 = vmul.f32 %v1172_v62, %v394_v53  ;;  %v586_v33 = vmul.f32 %v1172_v62, %v393_v34 }
  0xeb   :  { %513 = vadd.xlane.f32.xlu1 %v512_v41  ;;  %510 = vadd.xlane.f32.xlu0 %v509_v19  ;;  %v622_v30 = vsel %vm442_vm0, %v585_v29, 0.0  ;;  %v589_v22 = vmul.f32 %v1172_v62, %v396_v25  ;;  %v588_v35 = vmul.f32 %v1172_v62, %v395_v12  ;;  %v591_v53 = vmul.f32 %v1172_v62, %v398_v3 }
  0xec   :  { %v619_v60 = vsel %vm442_vm0, %v584_v32, 0.0  ;;  %v628_v6 = vsel %vm442_vm0, %v587_v4, 0.0  ;;  %v625_v14 = vsel %vm442_vm0, %v586_v33, 0.0  ;;  %v590_v7 = vmul.f32 %v1172_v62, %v397_v38 }
  0xed   :  { %v634_v24 = vsel %vm442_vm0, %v589_v22, 0.0  ;;  %v631_v34 = vsel %vm442_vm0, %v588_v35, 0.0  ;;  %v640_v2 = vsel %vm442_vm0, %v591_v53, 0.0  ;;  %v593_v25 = vmul.f32 %v1172_v62, %v400_v61 }
  0xee   :  { %v637_v12 = vsel %vm442_vm0, %v590_v7, 0.0  ;;  %v592_v27 = vmul.f32 %v1172_v62, %v399_v20  ;;  %v595_v3 = vmul.f32 %v1172_v62, %v402_v9  ;;  %v594_v10 = vmul.f32 %v1172_v62, %v1547_v39 }
  0xef   :  { %605 = vadd.xlane.f32.xlu1 %v604_v52  ;;  %516 = vadd.xlane.f32.xlu0 %v515_v0  ;;  %v646_v26 = vsel %vm442_vm0, %v593_v25, 0.0  ;;  %v597_v61 = vmul.f32 %v1172_v62, %v404_v47  ;;  %v596_v43 = vmul.f32 %v1172_v62, %v1548_v49  ;;  %v599_v51 = vmul.f32 %v1172_v62, %v406_v46 }
  0xf0   :  { %v643_v38 = vsel %vm442_vm0, %v592_v27, 0.0  ;;  %v652_v36 = vsel %vm442_vm0, %v595_v3, 0.0  ;;  %v649_v20 = vsel %vm442_vm0, %v594_v10, 0.0  ;;  %v598_v45 = vmul.f32 %v1172_v62, %v405_v42 }
  0xf1   :  { %v658_v37 = vsel %vm442_vm0, %v597_v61, 0.0  ;;  %v655_v9 = vsel %vm442_vm0, %v596_v43, 0.0  ;;  %v664_v28 = vsel %vm442_vm0, %v599_v51, 0.0  ;;  %v601_v54 = vmul.f32 %v1172_v62, %v408_v57  ;;  %v1287_v57 = vld [vmem:[%s1543_s4] ss:$0 sm:$0xff] }
  0xf2   :  { %v661_v47 = vsel %vm442_vm0, %v598_v45, 0.0  ;;  %v600_v40 = vmul.f32 %v1172_v62, %v407_v21  ;;  %v603_v46 = vmul.f32 %v1172_v62, %v410_v56  ;;  %v602_v1 = vmul.f32 %v1172_v62, %v409_v13 }
  0xf3   :  { %611 = vadd.xlane.f32.xlu1 %v610_v11  ;;  %608 = vadd.xlane.f32.xlu0 %v607_v8  ;;  %v670_v59 = vsel %vm442_vm0, %v601_v54, 0.0 }
  0xf4   :  { %v667_v42 = vsel %vm442_vm0, %v600_v40, 0.0  ;;  %v676_v63 = vsel %vm442_vm0, %v603_v46, 0.0  ;;  %v673_v21 = vsel %vm442_vm0, %v602_v1, 0.0 }
  0xf7   :  { %617 = vadd.xlane.f32.xlu1 %v616_v17  ;;  %614 = vadd.xlane.f32.xlu0 %v613_v23 }
  0xfb   :  { %623 = vadd.xlane.f32.xlu1 %v622_v30  ;;  %620 = vadd.xlane.f32.xlu0 %v619_v60 }
  0xff   :  { %629 = vadd.xlane.f32.xlu1 %v628_v6  ;;  %626 = vadd.xlane.f32.xlu0 %v625_v14 }
 0x103   :  { %635 = vadd.xlane.f32.xlu1 %v634_v24  ;;  %632 = vadd.xlane.f32.xlu0 %v631_v34 }
 0x107   :  { %641 = vadd.xlane.f32.xlu1 %v640_v2  ;;  %638 = vadd.xlane.f32.xlu0 %v637_v12 }
 0x10b   :  { %647 = vadd.xlane.f32.xlu1 %v646_v26  ;;  %644 = vadd.xlane.f32.xlu0 %v643_v38 }
 0x10f   :  { %653 = vadd.xlane.f32.xlu1 %v652_v36  ;;  %650 = vadd.xlane.f32.xlu0 %v649_v20 }
 0x113   :  { %659 = vadd.xlane.f32.xlu1 %v658_v37  ;;  %656 = vadd.xlane.f32.xlu0 %v655_v9 }
 0x117   :  { %665 = vadd.xlane.f32.xlu1 %v664_v28  ;;  %662 = vadd.xlane.f32.xlu0 %v661_v47 }
 0x11b   :  { %671 = vadd.xlane.f32.xlu1 %v670_v59  ;;  %668 = vadd.xlane.f32.xlu0 %v667_v42 }
 0x11f   :  { %677 = vadd.xlane.f32.xlu1 %v676_v63  ;;  %674 = vadd.xlane.f32.xlu0 %v673_v21 }
 0x144   :  { %v445_v18 = vpop.xlane.xlu1 %444 }
 0x145   :  { %v524_v55 = vadd.f32 %v1287_v57, %v445_v18 }
 0x147   :  { %550 = vst.msk [vmem:[%s1544_s5] sm:$0xff] %vm549_vm1, %v524_v55 }
 0x148   :  { %v448_v44 = vpop.xlane.xlu0 %447 }
 0x149   :  { %v525_v13 = vadd.f32 %v1287_v57, %v448_v44 }
 0x14b   :  { %551 = vst.msk [vmem:[%s1544_s5 + $0x8] sm:$0xff] %vm549_vm1, %v525_v13 }
 0x14c   :  { %v454_v62 = vpop.xlane.xlu1 %453  ;;  %v451_v56 = vpop.xlane.xlu0 %450 }
 0x14d   :  { %v527_v58 = vadd.f32 %v1287_v57, %v454_v62  ;;  %v526_v41 = vadd.f32 %v1287_v57, %v451_v56 }
 0x14f   :  { %553 = vst.msk [vmem:[%s1544_s5 + $0x18] sm:$0xff] %vm549_vm1, %v527_v58  ;;  %552 = vst.msk [vmem:[%s1544_s5 + $0x10] sm:$0xff] %vm549_vm1, %v526_v41 }
 0x150   :  { %v460_v19 = vpop.xlane.xlu1 %459  ;;  %v457_v50 = vpop.xlane.xlu0 %456 }
 0x151   :  { %v529_v48 = vadd.f32 %v1287_v57, %v460_v19  ;;  %v528_v52 = vadd.f32 %v1287_v57, %v457_v50 }
 0x153   :  { %555 = vst.msk [vmem:[%s1544_s5 + $0x28] sm:$0xff] %vm549_vm1, %v529_v48  ;;  %554 = vst.msk [vmem:[%s1544_s5 + $0x20] sm:$0xff] %vm549_vm1, %v528_v52 }
 0x154   :  { %v466_v0 = vpop.xlane.xlu1 %465  ;;  %v463_v15 = vpop.xlane.xlu0 %462 }
 0x155   :  { %v531_v5 = vadd.f32 %v1287_v57, %v466_v0  ;;  %v530_v11 = vadd.f32 %v1287_v57, %v463_v15 }
 0x157   :  { %557 = vst.msk [vmem:[%s1544_s5 + $0x38] sm:$0xff] %vm549_vm1, %v531_v5  ;;  %556 = vst.msk [vmem:[%s1544_s5 + $0x30] sm:$0xff] %vm549_vm1, %v530_v11 }
 0x158   :  { %v472_v8 = vpop.xlane.xlu1 %471  ;;  %v469_v31 = vpop.xlane.xlu0 %468 }
 0x159   :  { %v533_v16 = vadd.f32 %v1287_v57, %v472_v8  ;;  %v532_v17 = vadd.f32 %v1287_v57, %v469_v31 }
 0x15b   :  { %559 = vst.msk [vmem:[%s1544_s5 + $0x48] sm:$0xff] %vm549_vm1, %v533_v16  ;;  %558 = vst.msk [vmem:[%s1544_s5 + $0x40] sm:$0xff] %vm549_vm1, %v532_v17 }
 0x15c   :  { %v478_v23 = vpop.xlane.xlu1 %477  ;;  %v475_v29 = vpop.xlane.xlu0 %474 }
 0x15d   :  { %v535_v32 = vadd.f32 %v1287_v57, %v478_v23  ;;  %v534_v30 = vadd.f32 %v1287_v57, %v475_v29 }
 0x15f   :  { %561 = vst.msk [vmem:[%s1544_s5 + $0x58] sm:$0xff] %vm549_vm1, %v535_v32  ;;  %560 = vst.msk [vmem:[%s1544_s5 + $0x50] sm:$0xff] %vm549_vm1, %v534_v30 }
 0x160   :  { %v484_v60 = vpop.xlane.xlu1 %483  ;;  %v481_v4 = vpop.xlane.xlu0 %480 }
 0x161   :  { %v537_v33 = vadd.f32 %v1287_v57, %v484_v60  ;;  %v536_v6 = vadd.f32 %v1287_v57, %v481_v4 }
 0x163   :  { %563 = vst.msk [vmem:[%s1544_s5 + $0x68] sm:$0xff] %vm549_vm1, %v537_v33  ;;  %562 = vst.msk [vmem:[%s1544_s5 + $0x60] sm:$0xff] %vm549_vm1, %v536_v6 }
 0x164   :  { %v490_v14 = vpop.xlane.xlu1 %489  ;;  %v487_v22 = vpop.xlane.xlu0 %486 }
 0x165   :  { %v539_v35 = vadd.f32 %v1287_v57, %v490_v14  ;;  %v538_v24 = vadd.f32 %v1287_v57, %v487_v22 }
 0x167   :  { %565 = vst.msk [vmem:[%s1544_s5 + $0x78] sm:$0xff] %vm549_vm1, %v539_v35  ;;  %564 = vst.msk [vmem:[%s1544_s5 + $0x70] sm:$0xff] %vm549_vm1, %v538_v24 }
 0x168   :  { %v496_v34 = vpop.xlane.xlu1 %495  ;;  %v493_v53 = vpop.xlane.xlu0 %492 }
 0x169   :  { %v541_v7 = vadd.f32 %v1287_v57, %v496_v34  ;;  %v540_v2 = vadd.f32 %v1287_v57, %v493_v53 }
 0x16b   :  { %567 = vst.msk [vmem:[%s1544_s5 + $0x88] sm:$0xff] %vm549_vm1, %v541_v7  ;;  %566 = vst.msk [vmem:[%s1544_s5 + $0x80] sm:$0xff] %vm549_vm1, %v540_v2 }
 0x16c   :  { %v502_v12 = vpop.xlane.xlu1 %501  ;;  %v499_v25 = vpop.xlane.xlu0 %498 }
 0x16d   :  { %v543_v27 = vadd.f32 %v1287_v57, %v502_v12  ;;  %v542_v26 = vadd.f32 %v1287_v57, %v499_v25 }
 0x16f   :  { %569 = vst.msk [vmem:[%s1544_s5 + $0x98] sm:$0xff] %vm549_vm1, %v543_v27  ;;  %568 = vst.msk [vmem:[%s1544_s5 + $0x90] sm:$0xff] %vm549_vm1, %v542_v26 }
 0x170   :  { %v508_v38 = vpop.xlane.xlu1 %507  ;;  %v505_v3 = vpop.xlane.xlu0 %504 }
 0x171   :  { %v545_v39 = vadd.f32 %v1287_v57, %v508_v38  ;;  %v544_v10 = vadd.f32 %v1287_v57, %v505_v3 }
 0x173   :  { %571 = vst.msk [vmem:[%s1544_s5 + $0xa8] sm:$0xff] %vm549_vm1, %v545_v39  ;;  %570 = vst.msk [vmem:[%s1544_s5 + $0xa0] sm:$0xff] %vm549_vm1, %v544_v10 }
 0x174   :  { %v514_v36 = vpop.xlane.xlu1 %513  ;;  %v511_v20 = vpop.xlane.xlu0 %510 }
 0x175   :  { %v547_v61 = vadd.f32 %v1287_v57, %v514_v36  ;;  %v546_v49 = vadd.f32 %v1287_v57, %v511_v20 }
 0x177   :  { %573 = vst.msk [vmem:[%s1544_s5 + $0xb8] sm:$0xff] %vm549_vm1, %v547_v61  ;;  %572 = vst.msk [vmem:[%s1544_s5 + $0xb0] sm:$0xff] %vm549_vm1, %v546_v49 }
 0x178   :  { %v606_v43 = vpop.xlane.xlu1 %605  ;;  %v517_v37 = vpop.xlane.xlu0 %516 }
 0x179   :  { %v679_v9 = vadd.f32 %v1287_v57, %v606_v43  ;;  %v548_v51 = vadd.f32 %v1287_v57, %v517_v37 }
 0x17b   :  { %705 = vst.msk [vmem:[%s1544_s5] sm:$0xff] %vm704_vm2, %v679_v9 }
 0x17c   :  { %574 = vst.msk [vmem:[%s1544_s5 + $0xc0] sm:$0xff] %vm549_vm1, %v548_v51  ;;  %v612_v45 = vpop.xlane.xlu1 %611  ;;  %v609_v28 = vpop.xlane.xlu0 %608 }
 0x17d   :  { %v681_v47 = vadd.f32 %v1287_v57, %v612_v45  ;;  %v680_v54 = vadd.f32 %v1287_v57, %v609_v28 }
 0x17f   :  { %707 = vst.msk [vmem:[%s1544_s5 + $0x10] sm:$0xff] %vm704_vm2, %v681_v47  ;;  %706 = vst.msk [vmem:[%s1544_s5 + $0x8] sm:$0xff] %vm704_vm2, %v680_v54 }
 0x180   :  { %v618_v40 = vpop.xlane.xlu1 %617  ;;  %v615_v59 = vpop.xlane.xlu0 %614 }
 0x181   :  { %v683_v42 = vadd.f32 %v1287_v57, %v618_v40  ;;  %v682_v46 = vadd.f32 %v1287_v57, %v615_v59 }
 0x183   :  { %709 = vst.msk [vmem:[%s1544_s5 + $0x20] sm:$0xff] %vm704_vm2, %v683_v42  ;;  %708 = vst.msk [vmem:[%s1544_s5 + $0x18] sm:$0xff] %vm704_vm2, %v682_v46 }
 0x184   :  { %v624_v1 = vpop.xlane.xlu1 %623  ;;  %v621_v63 = vpop.xlane.xlu0 %620 }
 0x185   :  { %v685_v21 = vadd.f32 %v1287_v57, %v624_v1  ;;  %v684_v18 = vadd.f32 %v1287_v57, %v621_v63 }
 0x187   :  { %711 = vst.msk [vmem:[%s1544_s5 + $0x30] sm:$0xff] %vm704_vm2, %v685_v21  ;;  %710 = vst.msk [vmem:[%s1544_s5 + $0x28] sm:$0xff] %vm704_vm2, %v684_v18 }
 0x188   :  { %v630_v55 = vpop.xlane.xlu1 %629  ;;  %v627_v44 = vpop.xlane.xlu0 %626 }
 0x189   :  { %v687_v13 = vadd.f32 %v1287_v57, %v630_v55  ;;  %v686_v62 = vadd.f32 %v1287_v57, %v627_v44 }
 0x18b   :  { %713 = vst.msk [vmem:[%s1544_s5 + $0x40] sm:$0xff] %vm704_vm2, %v687_v13  ;;  %712 = vst.msk [vmem:[%s1544_s5 + $0x38] sm:$0xff] %vm704_vm2, %v686_v62 }
 0x18c   :  { %v636_v56 = vpop.xlane.xlu1 %635  ;;  %v633_v58 = vpop.xlane.xlu0 %632 }
 0x18d   :  { %v689_v41 = vadd.f32 %v1287_v57, %v636_v56  ;;  %v688_v19 = vadd.f32 %v1287_v57, %v633_v58 }
 0x18f   :  { %715 = vst.msk [vmem:[%s1544_s5 + $0x50] sm:$0xff] %vm704_vm2, %v689_v41  ;;  %714 = vst.msk [vmem:[%s1544_s5 + $0x48] sm:$0xff] %vm704_vm2, %v688_v19 }
 0x190   :  { %v642_v50 = vpop.xlane.xlu1 %641  ;;  %v639_v48 = vpop.xlane.xlu0 %638 }
 0x191   :  { %v691_v52 = vadd.f32 %v1287_v57, %v642_v50  ;;  %v690_v0 = vadd.f32 %v1287_v57, %v639_v48 }
 0x193   :  { %717 = vst.msk [vmem:[%s1544_s5 + $0x60] sm:$0xff] %vm704_vm2, %v691_v52  ;;  %716 = vst.msk [vmem:[%s1544_s5 + $0x58] sm:$0xff] %vm704_vm2, %v690_v0 }
 0x194   :  { %v648_v15 = vpop.xlane.xlu1 %647  ;;  %v645_v5 = vpop.xlane.xlu0 %644 }
 0x195   :  { %v693_v11 = vadd.f32 %v1287_v57, %v648_v15  ;;  %v692_v8 = vadd.f32 %v1287_v57, %v645_v5 }
 0x197   :  { %719 = vst.msk [vmem:[%s1544_s5 + $0x70] sm:$0xff] %vm704_vm2, %v693_v11  ;;  %718 = vst.msk [vmem:[%s1544_s5 + $0x68] sm:$0xff] %vm704_vm2, %v692_v8 }
 0x198   :  { %v654_v31 = vpop.xlane.xlu1 %653  ;;  %v651_v16 = vpop.xlane.xlu0 %650 }
 0x199   :  { %v695_v17 = vadd.f32 %v1287_v57, %v654_v31  ;;  %v694_v23 = vadd.f32 %v1287_v57, %v651_v16 }
 0x19b   :  { %721 = vst.msk [vmem:[%s1544_s5 + $0x80] sm:$0xff] %vm704_vm2, %v695_v17  ;;  %720 = vst.msk [vmem:[%s1544_s5 + $0x78] sm:$0xff] %vm704_vm2, %v694_v23 }
 0x19c   :  { %v660_v29 = vpop.xlane.xlu1 %659  ;;  %v657_v32 = vpop.xlane.xlu0 %656 }
 0x19d   :  { %v697_v30 = vadd.f32 %v1287_v57, %v660_v29  ;;  %v696_v60 = vadd.f32 %v1287_v57, %v657_v32 }
 0x19f   :  { %723 = vst.msk [vmem:[%s1544_s5 + $0x90] sm:$0xff] %vm704_vm2, %v697_v30  ;;  %722 = vst.msk [vmem:[%s1544_s5 + $0x88] sm:$0xff] %vm704_vm2, %v696_v60 }
 0x1a0   :  { %v666_v4 = vpop.xlane.xlu1 %665  ;;  %v663_v33 = vpop.xlane.xlu0 %662 }
 0x1a1   :  { %v699_v6 = vadd.f32 %v1287_v57, %v666_v4  ;;  %v698_v14 = vadd.f32 %v1287_v57, %v663_v33 }
 0x1a3   :  { %725 = vst.msk [vmem:[%s1544_s5 + $0xa0] sm:$0xff] %vm704_vm2, %v699_v6  ;;  %724 = vst.msk [vmem:[%s1544_s5 + $0x98] sm:$0xff] %vm704_vm2, %v698_v14 }
 0x1a4   :  { %v672_v22 = vpop.xlane.xlu1 %671  ;;  %v669_v35 = vpop.xlane.xlu0 %668 }
 0x1a5   :  { %v701_v24 = vadd.f32 %v1287_v57, %v672_v22  ;;  %v700_v34 = vadd.f32 %v1287_v57, %v669_v35 }
 0x1a7   :  { %727 = vst.msk [vmem:[%s1544_s5 + $0xb0] sm:$0xff] %vm704_vm2, %v701_v24  ;;  %726 = vst.msk [vmem:[%s1544_s5 + $0xa8] sm:$0xff] %vm704_vm2, %v700_v34 }
 0x1a8   :  { %v678_v53 = vpop.xlane.xlu1 %677  ;;  %v675_v7 = vpop.xlane.xlu0 %674 }
 0x1a9   :  { %v703_v2 = vadd.f32 %v1287_v57, %v678_v53  ;;  %v702_v12 = vadd.f32 %v1287_v57, %v675_v7 }
 0x1ab   :  { %729 = vst.msk [vmem:[%s1544_s5 + $0xc0] sm:$0xff] %vm704_vm2, %v703_v2  ;;  %728 = vst.msk [vmem:[%s1544_s5 + $0xb8] sm:$0xff] %vm704_vm2, %v702_v12 }

</bundles_post_ra>
